<compile_context>
chip_gen: v5e
topology: v5e:2x2
jax: 0.10.0
libtpu: 0.0.40
codegen_flags: <defaults>
</compile_context>

<pallas_src>
import jax
import jax.numpy as jnp
from jax.experimental import pallas as pl
from jax.experimental.pallas import tpu as pltpu

EPS = 1e-5


def _round_up(v, m):
    return ((v + m - 1) // m) * m


# ---------------------------------------------------------------------------
# Fused Pallas kernel: conv1->bn->relu -> conv3x3->bn->relu -> conv3->bn->+x->relu
# Layout: activation slabs are (C, M) with M = N*H*W on the lane axis.
# ---------------------------------------------------------------------------
def _make_bottleneck_kernel(N, H, W, planes, cout):
    M = N * H * W
    P8 = _round_up(planes, 8)          # 8-aligned per-tap row group in scratch
    C8 = _round_up(cout, 8)
    offsets = [(dy, dx) for dy in (-1, 0, 1) for dx in (-1, 0, 1)]  # k = (dy+1)*3+(dx+1)

    def kernel(x_ref, w2_ref, wpk_ref, bn_ref, msk_ref, o_ref, patch_ref):
        x = x_ref[...]                                   # (Cin, M) f32

        def bn_fold(y, g, b):
            # one-pass batch stats over the M (lane) axis, folded to scale/bias
            mean = jnp.mean(y, axis=1, keepdims=True)
            mean_sq = jnp.mean(y * y, axis=1, keepdims=True)
            var = mean_sq - mean * mean
            scale = g * jax.lax.rsqrt(var + EPS)         # EUP (free slot)
            bias = b - mean * scale
            return y * scale + bias                      # 2 VPU ops per element

        # packed BN params: g1|b1|g2|b2|g3|b3 at 8-aligned row offsets
        g1 = bn_ref[0:planes, :]
        b1 = bn_ref[P8:P8 + planes, :]
        g2 = bn_ref[2 * P8:2 * P8 + planes, :]
        b2 = bn_ref[3 * P8:3 * P8 + planes, :]
        g3 = bn_ref[4 * P8:4 * P8 + cout, :]
        b3 = bn_ref[4 * P8 + C8:4 * P8 + C8 + cout, :]

        # ---- stage 1: 1x1 conv (matmul) + BN + ReLU -------------------------
        w1 = wpk_ref[0:planes, :]                        # (P, Cin)
        y1 = jnp.dot(w1, x, preferred_element_type=jnp.float32)
        a1 = jnp.maximum(bn_fold(y1, g1, b1), 0.0)       # (P, M)

        # ---- stage 2: 3x3 conv (pad=1, stride=1) as ONE matmul --------------
        # Build a (9*P8, M) patch slab: tap k occupies rows [k*P8, k*P8+planes).
        # Host-precomputed masks zero the out-of-image taps; zero the scratch
        # once so padding rows never contain garbage.
        patch_ref[...] = jnp.zeros_like(patch_ref)
        for k, (dy, dx) in enumerate(offsets):
            s = dy * W + dx
            shifted = a1 if s == 0 else pltpu.roll(a1, (-s) % M, 1)   # XLU
            patch_ref[k * P8:k * P8 + planes, :] = shifted * msk_ref[k:k + 1, :]
        y2 = jnp.dot(w2_ref[...], patch_ref[...],        # (P, 9*P8) x (9*P8, M)
                     preferred_element_type=jnp.float32)
        a2 = jnp.maximum(bn_fold(y2, g2, b2), 0.0)       # (P, M)

        # ---- stage 3: 1x1 conv + BN + identity residual + ReLU --------------
        w3 = wpk_ref[P8:P8 + cout, 0:planes]             # (Cout, P)
        y3 = jnp.dot(w3, a2, preferred_element_type=jnp.float32)
        out = bn_fold(y3, g3, b3) + x
        o_ref[...] = jnp.maximum(out, 0.0).astype(o_ref.dtype)

    return kernel


def bottleneck_forward(x_nchw, params):
    """Fused Pallas implementation of Bottleneck.forward (stride=1, no downsample, ReLU)."""
    N, Cin, H, W = x_nchw.shape
    M = N * H * W
    planes = params["w1"].shape[0]
    Cout = params["w3"].shape[0]
    assert Cout == Cin, "identity residual requires in_channels == planes * expansion"

    P8 = _round_up(planes, 8)
    C8 = _round_up(Cout, 8)

    # channels-major slab; the lane axis is N*H*W (=128 here -> lane-dense vregs/stores)
    x2d = jnp.transpose(x_nchw, (1, 0, 2, 3)).reshape(Cin, M).astype(jnp.float32)

    # ---- stage-2 weight as a single (planes, 9*P8) matrix (tap-major, padded) ----
    w2_t = jnp.transpose(params["w2"], (0, 2, 3, 1)).reshape(planes, 9, planes)  # [o,k,i]
    w2p = jnp.zeros((planes, 9, P8), jnp.float32).at[:, :, :planes].set(w2_t)
    w2p = w2p.reshape(planes, 9 * P8)

    # ---- w1 / w3 packed into one buffer (8-aligned row groups) ----
    w1 = params["w1"][:, :, 0, 0].astype(jnp.float32)                 # (P, Cin)
    w3 = params["w3"][:, :, 0, 0].astype(jnp.float32)                 # (Cout, P)
    wpk = jnp.zeros((P8 + Cout, Cin), jnp.float32)
    wpk = wpk.at[:planes, :].set(w1)
    wpk = wpk.at[P8:P8 + Cout, :planes].set(w3)

    # ---- all six BN affine vectors packed into one (4*P8 + 2*C8, 1) column ----
    bnp = jnp.zeros((4 * P8 + 2 * C8, 1), jnp.float32)
    bnp = bnp.at[0:planes, 0].set(params["g1"].ravel())
    bnp = bnp.at[P8:P8 + planes, 0].set(params["b1"].ravel())
    bnp = bnp.at[2 * P8:2 * P8 + planes, 0].set(params["g2"].ravel())
    bnp = bnp.at[3 * P8:3 * P8 + planes, 0].set(params["b2"].ravel())
    bnp = bnp.at[4 * P8:4 * P8 + Cout, 0].set(params["g3"].ravel())
    bnp = bnp.at[4 * P8 + C8:4 * P8 + C8 + Cout, 0].set(params["b3"].ravel())

    # ---- host-precomputed border-validity masks for the 9 taps: (9, M) f32 ----
    m_idx = jnp.arange(M, dtype=jnp.int32)
    hh = (m_idx // W) % H
    ww = m_idx % W
    mask_rows = []
    for dy in (-1, 0, 1):
        for dx in (-1, 0, 1):
            valid = ((hh + dy >= 0) & (hh + dy < H) &
                     (ww + dx >= 0) & (ww + dx < W))
            mask_rows.append(valid)
    mask = jnp.stack(mask_rows, axis=0).astype(jnp.float32)            # (9, M)

    kernel = _make_bottleneck_kernel(N, H, W, planes, Cout)
    vmem = pl.BlockSpec(memory_space=pltpu.MemorySpace.VMEM)           # whole array, no grid

    out2d = pl.pallas_call(
        kernel,
        out_shape=jax.ShapeDtypeStruct((Cout, M), jnp.float32),
        in_specs=[vmem, vmem, vmem, vmem, vmem],
        out_specs=vmem,
        scratch_shapes=[pltpu.VMEM((9 * P8, M), jnp.float32)],         # patch slab
    )(x2d, w2p, wpk, bnp, mask)

    return jnp.transpose(out2d.reshape(Cout, N, H, W), (1, 0, 2, 3))   # back to NCHW


# ---------------------------------------------------------------------------
# Pure-JAX reference (verification only)
# ---------------------------------------------------------------------------
def _ref_bottleneck(x, p):
    def bn(y, g, b):
        m = jnp.mean(y, axis=(0, 2, 3), keepdims=True)
        v = jnp.mean((y - m) ** 2, axis=(0, 2, 3), keepdims=True)
        return (g.reshape(1, -1, 1, 1) * (y - m) / jnp.sqrt(v + EPS)
                + b.reshape(1, -1, 1, 1))

    def conv(x, w, pad):
        return jax.lax.conv_general_dilated(
            x, w, (1, 1), [(pad, pad), (pad, pad)],
            dimension_numbers=("NCHW", "OIHW", "NCHW"))

    out = jax.nn.relu(bn(conv(x, p["w1"], 0), p["g1"].ravel(), p["b1"].ravel()))
    out = jax.nn.relu(bn(conv(out, p["w2"], 1), p["g2"].ravel(), p["b2"].ravel()))
    out = bn(conv(out, p["w3"], 0), p["g3"].ravel(), p["b3"].ravel()) + x
    return jax.nn.relu(out)


if __name__ == "__main__":
    # Bottleneck(in_channels=16, planes=4): expansion*planes == in_channels,
    # so the identity residual path of the PyTorch module is valid.
    N, H, W, Cin, planes = 2, 8, 8, 16, 4
    Cout = planes * 4

    key = jax.random.PRNGKey(0)
    ks = jax.random.split(key, 10)
    x = jax.random.normal(ks[0], (N, Cin, H, W), jnp.float32)

    params = {
        # conv weights in PyTorch OIHW layout
        "w1": jax.random.normal(ks[1], (planes, Cin, 1, 1), jnp.float32) * 0.1,
        "w2": jax.random.normal(ks[2], (planes, planes, 3, 3), jnp.float32) * 0.1,
        "w3": jax.random.normal(ks[3], (Cout, planes, 1, 1), jnp.float32) * 0.1,
        # BN affine params
        "g1": 1.0 + 0.1 * jax.random.normal(ks[4], (1, planes), jnp.float32),
        "b1": 0.1 * jax.random.normal(ks[5], (1, planes), jnp.float32),
        "g2": 1.0 + 0.1 * jax.random.normal(ks[6], (1, planes), jnp.float32),
        "b2": 0.1 * jax.random.normal(ks[7], (1, planes), jnp.float32),
        "g3": 1.0 + 0.1 * jax.random.normal(ks[8], (1, Cout), jnp.float32),
        "b3": 0.1 * jax.random.normal(ks[9], (1, Cout), jnp.float32),
    }

    out = jax.block_until_ready(bottleneck_forward(x, params))
    ref = jax.block_until_ready(_ref_bottleneck(x, params))

    assert out.shape == (N, Cout, H, W), out.shape
    assert jnp.allclose(out, ref, atol=2e-4, rtol=2e-4), float(
        jnp.max(jnp.abs(out - ref)))
    print("KERNEL_OK")
</pallas_src>

<mosaic_0001>
module attributes {stable_mosaic.version = 11 : i64} {
  func.func @kernel(%arg0: memref<16x128xf32, #tpu.memory_space<vmem>>, %arg1: memref<4x72xf32, #tpu.memory_space<vmem>>, %arg2: memref<24x16xf32, #tpu.memory_space<vmem>>, %arg3: memref<64x1xf32, #tpu.memory_space<vmem>>, %arg4: memref<9x128xf32, #tpu.memory_space<vmem>>, %arg5: memref<16x128xf32, #tpu.memory_space<vmem>>, %arg6: memref<72x128xf32, #tpu.memory_space<vmem>>) attributes {dimension_semantics = [], scalar_prefetch = 0 : i64, scratch_operands = 1 : i64, tpu.core_type = #tpu.core_type<tc>} {
    %c0 = arith.constant 0 : index
    %c0_0 = arith.constant 0 : index
    %0 = vector.load %arg0[%c0, %c0_0] : memref<16x128xf32, #tpu.memory_space<vmem>>, vector<16x128xf32>
    %c0_1 = arith.constant 0 : index
    %c0_2 = arith.constant 0 : index
    %1 = vector.load %arg3[%c0_1, %c0_2] : memref<64x1xf32, #tpu.memory_space<vmem>>, vector<4x1xf32>
    %c8 = arith.constant 8 : index
    %c0_3 = arith.constant 0 : index
    %2 = vector.load %arg3[%c8, %c0_3] : memref<64x1xf32, #tpu.memory_space<vmem>>, vector<4x1xf32>
    %c16 = arith.constant 16 : index
    %c0_4 = arith.constant 0 : index
    %3 = vector.load %arg3[%c16, %c0_4] : memref<64x1xf32, #tpu.memory_space<vmem>>, vector<4x1xf32>
    %c24 = arith.constant 24 : index
    %c0_5 = arith.constant 0 : index
    %4 = vector.load %arg3[%c24, %c0_5] : memref<64x1xf32, #tpu.memory_space<vmem>>, vector<4x1xf32>
    %c32 = arith.constant 32 : index
    %c0_6 = arith.constant 0 : index
    %5 = vector.load %arg3[%c32, %c0_6] : memref<64x1xf32, #tpu.memory_space<vmem>>, vector<16x1xf32>
    %c48 = arith.constant 48 : index
    %c0_7 = arith.constant 0 : index
    %6 = vector.load %arg3[%c48, %c0_7] : memref<64x1xf32, #tpu.memory_space<vmem>>, vector<16x1xf32>
    %c0_8 = arith.constant 0 : index
    %c0_9 = arith.constant 0 : index
    %7 = vector.load %arg2[%c0_8, %c0_9] : memref<24x16xf32, #tpu.memory_space<vmem>>, vector<4x16xf32>
    %cst = arith.constant dense<0.000000e+00> : vector<4x128xf32>
    %8 = tpu.matmul %7, %0, %cst {dimension_numbers = #tpu.dot_dimension_numbers<[1], [0], [0], [1], [0, 0, 1, 1], [], []>} : vector<4x16xf32>, vector<16x128xf32>, vector<4x128xf32> -> vector<4x128xf32>
    %cst_10 = arith.constant dense<0.000000e+00> : vector<4xf32>
    %9 = vector.multi_reduction <add>, %8, %cst_10 [1] : vector<4x128xf32> to vector<4xf32>
    %10 = vector.shape_cast %9 : vector<4xf32> to vector<4x1xf32>
    %cst_11 = arith.constant 1.280000e+02 : f32
    %11 = vector.broadcast %cst_11 : f32 to vector<4x1xf32>
    %12 = arith.divf %10, %11 : vector<4x1xf32>
    %13 = arith.mulf %8, %8 : vector<4x128xf32>
    %cst_12 = arith.constant dense<0.000000e+00> : vector<4xf32>
    %14 = vector.multi_reduction <add>, %13, %cst_12 [1] : vector<4x128xf32> to vector<4xf32>
    %15 = vector.shape_cast %14 : vector<4xf32> to vector<4x1xf32>
    %cst_13 = arith.constant 1.280000e+02 : f32
    %16 = vector.broadcast %cst_13 : f32 to vector<4x1xf32>
    %17 = arith.divf %15, %16 : vector<4x1xf32>
    %18 = arith.mulf %12, %12 : vector<4x1xf32>
    %19 = arith.subf %17, %18 : vector<4x1xf32>
    %cst_14 = arith.constant 9.99999974E-6 : f32
    %20 = vector.broadcast %cst_14 : f32 to vector<4x1xf32>
    %21 = arith.addf %19, %20 : vector<4x1xf32>
    %22 = math.rsqrt %21 : vector<4x1xf32>
    %23 = arith.mulf %1, %22 : vector<4x1xf32>
    %24 = arith.mulf %12, %23 : vector<4x1xf32>
    %25 = arith.subf %2, %24 : vector<4x1xf32>
    %26 = vector.broadcast %23 : vector<4x1xf32> to vector<4x128xf32>
    %27 = arith.mulf %8, %26 : vector<4x128xf32>
    %28 = vector.broadcast %25 : vector<4x1xf32> to vector<4x128xf32>
    %29 = arith.addf %27, %28 : vector<4x128xf32>
    %cst_15 = arith.constant 0.000000e+00 : f32
    %30 = vector.broadcast %cst_15 : f32 to vector<4x128xf32>
    %31 = arith.maximumf %29, %30 : vector<4x128xf32>
    %cst_16 = arith.constant 0.000000e+00 : f32
    %32 = vector.broadcast %cst_16 : f32 to vector<72x128xf32>
    %c0_17 = arith.constant 0 : index
    %c0_18 = arith.constant 0 : index
    %33 = vector.load %arg6[%c0_17, %c0_18] : memref<72x128xf32, #tpu.memory_space<vmem>>, vector<72x128xf32>
    tpu.vector_store %arg6[%c0_17, %c0_18], %32 {strides = array<i32>} : memref<72x128xf32, #tpu.memory_space<vmem>>, vector<72x128xf32>,
    %c9_i32 = arith.constant 9 : i32
    %34 = tpu.dynamic_rotate %31 by %c9_i32 dim 1 : vector<4x128xf32>, i32 -> vector<4x128xf32>
    %c0_19 = arith.constant 0 : index
    %c0_20 = arith.constant 0 : index
    %35 = vector.load %arg4[%c0_19, %c0_20] : memref<9x128xf32, #tpu.memory_space<vmem>>, vector<1x128xf32>
    %36 = vector.broadcast %35 : vector<1x128xf32> to vector<4x128xf32>
    %37 = arith.mulf %34, %36 : vector<4x128xf32>
    %c0_21 = arith.constant 0 : index
    %c0_22 = arith.constant 0 : index
    %38 = vector.load %arg6[%c0_21, %c0_22] : memref<72x128xf32, #tpu.memory_space<vmem>>, vector<4x128xf32>
    tpu.vector_store %arg6[%c0_21, %c0_22], %37 {strides = array<i32>} : memref<72x128xf32, #tpu.memory_space<vmem>>, vector<4x128xf32>,
    %c8_i32 = arith.constant 8 : i32
    %39 = tpu.dynamic_rotate %31 by %c8_i32 dim 1 : vector<4x128xf32>, i32 -> vector<4x128xf32>
    %c1 = arith.constant 1 : index
    %c0_23 = arith.constant 0 : index
    %40 = vector.load %arg4[%c1, %c0_23] : memref<9x128xf32, #tpu.memory_space<vmem>>, vector<1x128xf32>
    %41 = vector.broadcast %40 : vector<1x128xf32> to vector<4x128xf32>
    %42 = arith.mulf %39, %41 : vector<4x128xf32>
    %c8_24 = arith.constant 8 : index
    %c0_25 = arith.constant 0 : index
    %43 = vector.load %arg6[%c8_24, %c0_25] : memref<72x128xf32, #tpu.memory_space<vmem>>, vector<4x128xf32>
    tpu.vector_store %arg6[%c8_24, %c0_25], %42 {strides = array<i32>} : memref<72x128xf32, #tpu.memory_space<vmem>>, vector<4x128xf32>,
    %c7_i32 = arith.constant 7 : i32
    %44 = tpu.dynamic_rotate %31 by %c7_i32 dim 1 : vector<4x128xf32>, i32 -> vector<4x128xf32>
    %c2 = arith.constant 2 : index
    %c0_26 = arith.constant 0 : index
    %45 = vector.load %arg4[%c2, %c0_26] : memref<9x128xf32, #tpu.memory_space<vmem>>, vector<1x128xf32>
    %46 = vector.broadcast %45 : vector<1x128xf32> to vector<4x128xf32>
    %47 = arith.mulf %44, %46 : vector<4x128xf32>
    %c16_27 = arith.constant 16 : index
    %c0_28 = arith.constant 0 : index
    %48 = vector.load %arg6[%c16_27, %c0_28] : memref<72x128xf32, #tpu.memory_space<vmem>>, vector<4x128xf32>
    tpu.vector_store %arg6[%c16_27, %c0_28], %47 {strides = array<i32>} : memref<72x128xf32, #tpu.memory_space<vmem>>, vector<4x128xf32>,
    %c1_i32 = arith.constant 1 : i32
    %49 = tpu.dynamic_rotate %31 by %c1_i32 dim 1 : vector<4x128xf32>, i32 -> vector<4x128xf32>
    %c3 = arith.constant 3 : index
    %c0_29 = arith.constant 0 : index
    %50 = vector.load %arg4[%c3, %c0_29] : memref<9x128xf32, #tpu.memory_space<vmem>>, vector<1x128xf32>
    %51 = vector.broadcast %50 : vector<1x128xf32> to vector<4x128xf32>
    %52 = arith.mulf %49, %51 : vector<4x128xf32>
    %c24_30 = arith.constant 24 : index
    %c0_31 = arith.constant 0 : index
    %53 = vector.load %arg6[%c24_30, %c0_31] : memref<72x128xf32, #tpu.memory_space<vmem>>, vector<4x128xf32>
    tpu.vector_store %arg6[%c24_30, %c0_31], %52 {strides = array<i32>} : memref<72x128xf32, #tpu.memory_space<vmem>>, vector<4x128xf32>,
    %c4 = arith.constant 4 : index
    %c0_32 = arith.constant 0 : index
    %54 = vector.load %arg4[%c4, %c0_32] : memref<9x128xf32, #tpu.memory_space<vmem>>, vector<1x128xf32>
    %55 = vector.broadcast %54 : vector<1x128xf32> to vector<4x128xf32>
    %56 = arith.mulf %31, %55 : vector<4x128xf32>
    %c32_33 = arith.constant 32 : index
    %c0_34 = arith.constant 0 : index
    %57 = vector.load %arg6[%c32_33, %c0_34] : memref<72x128xf32, #tpu.memory_space<vmem>>, vector<4x128xf32>
    tpu.vector_store %arg6[%c32_33, %c0_34], %56 {strides = array<i32>} : memref<72x128xf32, #tpu.memory_space<vmem>>, vector<4x128xf32>,
    %c127_i32 = arith.constant 127 : i32
    %58 = tpu.dynamic_rotate %31 by %c127_i32 dim 1 : vector<4x128xf32>, i32 -> vector<4x128xf32>
    %c5 = arith.constant 5 : index
    %c0_35 = arith.constant 0 : index
    %59 = vector.load %arg4[%c5, %c0_35] : memref<9x128xf32, #tpu.memory_space<vmem>>, vector<1x128xf32>
    %60 = vector.broadcast %59 : vector<1x128xf32> to vector<4x128xf32>
    %61 = arith.mulf %58, %60 : vector<4x128xf32>
    %c40 = arith.constant 40 : index
    %c0_36 = arith.constant 0 : index
    %62 = vector.load %arg6[%c40, %c0_36] : memref<72x128xf32, #tpu.memory_space<vmem>>, vector<4x128xf32>
    tpu.vector_store %arg6[%c40, %c0_36], %61 {strides = array<i32>} : memref<72x128xf32, #tpu.memory_space<vmem>>, vector<4x128xf32>,
    %c121_i32 = arith.constant 121 : i32
    %63 = tpu.dynamic_rotate %31 by %c121_i32 dim 1 : vector<4x128xf32>, i32 -> vector<4x128xf32>
    %c6 = arith.constant 6 : index
    %c0_37 = arith.constant 0 : index
    %64 = vector.load %arg4[%c6, %c0_37] : memref<9x128xf32, #tpu.memory_space<vmem>>, vector<1x128xf32>
    %65 = vector.broadcast %64 : vector<1x128xf32> to vector<4x128xf32>
    %66 = arith.mulf %63, %65 : vector<4x128xf32>
    %c48_38 = arith.constant 48 : index
    %c0_39 = arith.constant 0 : index
    %67 = vector.load %arg6[%c48_38, %c0_39] : memref<72x128xf32, #tpu.memory_space<vmem>>, vector<4x128xf32>
    tpu.vector_store %arg6[%c48_38, %c0_39], %66 {strides = array<i32>} : memref<72x128xf32, #tpu.memory_space<vmem>>, vector<4x128xf32>,
    %c120_i32 = arith.constant 120 : i32
    %68 = tpu.dynamic_rotate %31 by %c120_i32 dim 1 : vector<4x128xf32>, i32 -> vector<4x128xf32>
    %c7 = arith.constant 7 : index
    %c0_40 = arith.constant 0 : index
    %69 = vector.load %arg4[%c7, %c0_40] : memref<9x128xf32, #tpu.memory_space<vmem>>, vector<1x128xf32>
    %70 = vector.broadcast %69 : vector<1x128xf32> to vector<4x128xf32>
    %71 = arith.mulf %68, %70 : vector<4x128xf32>
    %c56 = arith.constant 56 : index
    %c0_41 = arith.constant 0 : index
    %72 = vector.load %arg6[%c56, %c0_41] : memref<72x128xf32, #tpu.memory_space<vmem>>, vector<4x128xf32>
    tpu.vector_store %arg6[%c56, %c0_41], %71 {strides = array<i32>} : memref<72x128xf32, #tpu.memory_space<vmem>>, vector<4x128xf32>,
    %c119_i32 = arith.constant 119 : i32
    %73 = tpu.dynamic_rotate %31 by %c119_i32 dim 1 : vector<4x128xf32>, i32 -> vector<4x128xf32>
    %c8_42 = arith.constant 8 : index
    %c0_43 = arith.constant 0 : index
    %74 = vector.load %arg4[%c8_42, %c0_43] : memref<9x128xf32, #tpu.memory_space<vmem>>, vector<1x128xf32>
    %75 = vector.broadcast %74 : vector<1x128xf32> to vector<4x128xf32>
    %76 = arith.mulf %73, %75 : vector<4x128xf32>
    %c64 = arith.constant 64 : index
    %c0_44 = arith.constant 0 : index
    %77 = vector.load %arg6[%c64, %c0_44] : memref<72x128xf32, #tpu.memory_space<vmem>>, vector<4x128xf32>
    tpu.vector_store %arg6[%c64, %c0_44], %76 {strides = array<i32>} : memref<72x128xf32, #tpu.memory_space<vmem>>, vector<4x128xf32>,
    %c0_45 = arith.constant 0 : index
    %c0_46 = arith.constant 0 : index
    %78 = vector.load %arg1[%c0_45, %c0_46] : memref<4x72xf32, #tpu.memory_space<vmem>>, vector<4x72xf32>
    %c0_47 = arith.constant 0 : index
    %c0_48 = arith.constant 0 : index
    %79 = vector.load %arg6[%c0_47, %c0_48] : memref<72x128xf32, #tpu.memory_space<vmem>>, vector<72x128xf32>
    %cst_49 = arith.constant dense<0.000000e+00> : vector<4x128xf32>
    %80 = tpu.matmul %78, %79, %cst_49 {dimension_numbers = #tpu.dot_dimension_numbers<[1], [0], [0], [1], [0, 0, 1, 1], [], []>} : vector<4x72xf32>, vector<72x128xf32>, vector<4x128xf32> -> vector<4x128xf32>
    %cst_50 = arith.constant dense<0.000000e+00> : vector<4xf32>
    %81 = vector.multi_reduction <add>, %80, %cst_50 [1] : vector<4x128xf32> to vector<4xf32>
    %82 = vector.shape_cast %81 : vector<4xf32> to vector<4x1xf32>
    %cst_51 = arith.constant 1.280000e+02 : f32
    %83 = vector.broadcast %cst_51 : f32 to vector<4x1xf32>
    %84 = arith.divf %82, %83 : vector<4x1xf32>
    %85 = arith.mulf %80, %80 : vector<4x128xf32>
    %cst_52 = arith.constant dense<0.000000e+00> : vector<4xf32>
    %86 = vector.multi_reduction <add>, %85, %cst_52 [1] : vector<4x128xf32> to vector<4xf32>
    %87 = vector.shape_cast %86 : vector<4xf32> to vector<4x1xf32>
    %cst_53 = arith.constant 1.280000e+02 : f32
    %88 = vector.broadcast %cst_53 : f32 to vector<4x1xf32>
    %89 = arith.divf %87, %88 : vector<4x1xf32>
    %90 = arith.mulf %84, %84 : vector<4x1xf32>
    %91 = arith.subf %89, %90 : vector<4x1xf32>
    %cst_54 = arith.constant 9.99999974E-6 : f32
    %92 = vector.broadcast %cst_54 : f32 to vector<4x1xf32>
    %93 = arith.addf %91, %92 : vector<4x1xf32>
    %94 = math.rsqrt %93 : vector<4x1xf32>
    %95 = arith.mulf %3, %94 : vector<4x1xf32>
    %96 = arith.mulf %84, %95 : vector<4x1xf32>
    %97 = arith.subf %4, %96 : vector<4x1xf32>
    %98 = vector.broadcast %95 : vector<4x1xf32> to vector<4x128xf32>
    %99 = arith.mulf %80, %98 : vector<4x128xf32>
    %100 = vector.broadcast %97 : vector<4x1xf32> to vector<4x128xf32>
    %101 = arith.addf %99, %100 : vector<4x128xf32>
    %cst_55 = arith.constant 0.000000e+00 : f32
    %102 = vector.broadcast %cst_55 : f32 to vector<4x128xf32>
    %103 = arith.maximumf %101, %102 : vector<4x128xf32>
    %c8_56 = arith.constant 8 : index
    %c0_57 = arith.constant 0 : index
    %104 = vector.load %arg2[%c8_56, %c0_57] : memref<24x16xf32, #tpu.memory_space<vmem>>, vector<16x4xf32>
    %cst_58 = arith.constant dense<0.000000e+00> : vector<16x128xf32>
    %105 = tpu.matmul %104, %103, %cst_58 {dimension_numbers = #tpu.dot_dimension_numbers<[1], [0], [0], [1], [0, 0, 1, 1], [], []>} : vector<16x4xf32>, vector<4x128xf32>, vector<16x128xf32> -> vector<16x128xf32>
    %cst_59 = arith.constant dense<0.000000e+00> : vector<16xf32>
    %106 = vector.multi_reduction <add>, %105, %cst_59 [1] : vector<16x128xf32> to vector<16xf32>
    %107 = vector.shape_cast %106 : vector<16xf32> to vector<16x1xf32>
    %cst_60 = arith.constant 1.280000e+02 : f32
    %108 = vector.broadcast %cst_60 : f32 to vector<16x1xf32>
    %109 = arith.divf %107, %108 : vector<16x1xf32>
    %110 = arith.mulf %105, %105 : vector<16x128xf32>
    %cst_61 = arith.constant dense<0.000000e+00> : vector<16xf32>
    %111 = vector.multi_reduction <add>, %110, %cst_61 [1] : vector<16x128xf32> to vector<16xf32>
    %112 = vector.shape_cast %111 : vector<16xf32> to vector<16x1xf32>
    %cst_62 = arith.constant 1.280000e+02 : f32
    %113 = vector.broadcast %cst_62 : f32 to vector<16x1xf32>
    %114 = arith.divf %112, %113 : vector<16x1xf32>
    %115 = arith.mulf %109, %109 : vector<16x1xf32>
    %116 = arith.subf %114, %115 : vector<16x1xf32>
    %cst_63 = arith.constant 9.99999974E-6 : f32
    %117 = vector.broadcast %cst_63 : f32 to vector<16x1xf32>
    %118 = arith.addf %116, %117 : vector<16x1xf32>
    %119 = math.rsqrt %118 : vector<16x1xf32>
    %120 = arith.mulf %5, %119 : vector<16x1xf32>
    %121 = arith.mulf %109, %120 : vector<16x1xf32>
    %122 = arith.subf %6, %121 : vector<16x1xf32>
    %123 = vector.broadcast %120 : vector<16x1xf32> to vector<16x128xf32>
    %124 = arith.mulf %105, %123 : vector<16x128xf32>
    %125 = vector.broadcast %122 : vector<16x1xf32> to vector<16x128xf32>
    %126 = arith.addf %124, %125 : vector<16x128xf32>
    %127 = arith.addf %126, %0 : vector<16x128xf32>
    %cst_64 = arith.constant 0.000000e+00 : f32
    %128 = vector.broadcast %cst_64 : f32 to vector<16x128xf32>
    %129 = arith.maximumf %127, %128 : vector<16x128xf32>
    %c0_65 = arith.constant 0 : index
    %c0_66 = arith.constant 0 : index
    %130 = vector.load %arg5[%c0_65, %c0_66] : memref<16x128xf32, #tpu.memory_space<vmem>>, vector<16x128xf32>
    tpu.vector_store %arg5[%c0_65, %c0_66], %129 {strides = array<i32>} : memref<16x128xf32, #tpu.memory_space<vmem>>, vector<16x128xf32>,
    return
  }
}

</mosaic_0001>

<bundles_post_ra>
// kernel: tpu_custom_call.1
= control target key start
LH: loop header
LB: loop body
LE: loop exit
PB: predicated region body
PF: predicated region fallthrough
CT: control target
= control target key end

     0   :  { %vm32_vm0 = vcmask 130048   ;;  %s576_s0 = inlined_call_operand.vmem [shape: f32[16,128], index: 0, kind: input, shape index: {}]   ;;  %s577_s1 = inlined_call_operand.vmem [shape: f32[4,72], index: 1, kind: input, shape index: {}]   ;;  %s578_s2 = inlined_call_operand.vmem [shape: f32[24,16], index: 2, kind: input, shape index: {}]   ;;  %s579_s3 = inlined_call_operand.vmem [shape: f32[64,1], index: 3, kind: input, shape index: {}]   ;;  %s580_s4 = inlined_call_operand.vmem [shape: f32[9,128], index: 4, kind: input, shape index: {}]   ;;  %s581_s5 = inlined_call_operand.hbm [shape: f32[16,128], index: 5, kind: output, shape index: {}]  }
   0x1   :  { %v476_v0 = vld [vmem:[%s576_s0 + $0x8] sm:$0xff]  ;;  %v481_v1 = vld [vmem:[%s576_s0] sm:$0xff] }
   0x2   :  { %v31_v2 = vld [vmem:[%s578_s2] sm:$0xf]  ;;  %50 = vmatpush.msra.mxu0 %v476_v0 }
   0x4   :  { %51 = vmatpush.msra.mxu0 %v481_v1 }
   0x5   :  { %364 = vmatmul.msk.f32.vlgmr.msra.gmra.mxu0 %vm32_vm0, %v31_v2 }
   0x6   :  { %10 = vsyncpa [#allocation4], 0  ;;  %vm56_vm1 = vcmask 1043456   ;;  %v430_v7 = vmov 128.0   ;;  %v431_v11 = vmov 0   ;;  %v432_v34 = vmov 0.0  }
   0x7   :  { %394 = vrcp.f32 %v430_v7  ;;  %382 = vset.pattern.permute.xlu1 %v431_v11  ;;  %383 = vset.pattern.permute.xlu0 %v431_v11  ;;  %v23_v27 = vld [vmem:[%s579_s3] sm:$0xf]  ;;  %v24_v32 = vld [vmem:[%s579_s3 + $0x8] sm:$0xf]  ;;  %110 = vst [vmem:[#allocation2 + $0x8] sm:$0xff] %v432_v34  ;;  %s433_s29 = smov 127  }
   0x8   :  { %384 = vset.pattern.permute.xlu2 %v431_v11  ;;  %102 = vst [vmem:[#allocation2 + $0x30] sm:$0xff] %v432_v34  ;;  %v392_v39 = vld [vmem:[%s580_s4 + $0x4] ss:$0 sm:$0xff]  ;;  %s434_s30 = smov 121   ;;  %s435_s6 = smov 119   ;;  %vm173_vm6 = vcmask 588800  }
   0x9   :  { %103 = vst [vmem:[#allocation2] sm:$0xff] %v432_v34  ;;  %s436_s7 = smov 7   ;;  %s437_s8 = smov 120   ;;  %v385_v42 = vld [vmem:[%s580_s4 + $0x8] ss:$0 sm:$0xff]  ;;  %vm237_vm10 = vcmask 31744  }
   0xa   :  { %104 = vst [vmem:[#allocation2 + $0x18] sm:$0xff] %v432_v34  ;;  %s438_s9 = smov 9   ;;  %s439_s10 = smov 1   ;;  %v386_v45 = vld [vmem:[%s580_s4 + $0x7] ss:$0 sm:$0xff] }
   0xb   :  { %105 = vst [vmem:[#allocation2 + $0x10] sm:$0xff] %v432_v34  ;;  %s440_s11 = smov 8   ;;  %v387_v49 = vld [vmem:[%s580_s4 + $0x3] ss:$0 sm:$0xff]  ;;  %v388_v53 = vld [vmem:[%s580_s4 + $0x5] ss:$0 sm:$0xff] }
   0xc   :  { %106 = vst [vmem:[#allocation2 + $0x20] sm:$0xff] %v432_v34  ;;  %v389_v54 = vld [vmem:[%s580_s4 + $0x6] ss:$0 sm:$0xff]  ;;  %v390_v55 = vld [vmem:[%s580_s4 + $0x1] ss:$0 sm:$0xff]  ;;  %s352_s20 = sshll.u32 %s581_s5, 4  ;;  %s353_s20 = int_to_ptr.hbm [resolvable:$true] %s352_s20 }
   0xd   :  { %v395_v8 = vpop.eup %394  ;;  %107 = vst [vmem:[#allocation2 + $0x28] sm:$0xff] %v432_v34  ;;  %v391_v62 = vld [vmem:[%s580_s4 + $0x2] ss:$0 sm:$0xff]  ;;  %s442_s22 = smov 128  }
   0xe   :  { %v61_v9 = vmul.f32 128.0, %v395_v8  ;;  %vm65_vm2 = vweird.f32 %v395_v8  ;;  %108 = vst [vmem:[#allocation2 + $0x40] sm:$0xff] %v432_v34 }
   0xf   :  { %109 = vst [vmem:[#allocation2 + $0x38] sm:$0xff] %v432_v34 }
  0x10   :  { %v62_v10 = vsub.f32 1.0, %v61_v9 }
  0x12   :  { %v63_v12 = vmul.f32 %v395_v8, %v62_v10 }
  0x14   :  { %v64_v13 = vadd.f32 %v395_v8, %v63_v12  ;;  %v163_v12 = vld [vmem:[%s577_s1] sm:$0xf] }
  0x16   :  { %v490_v15 = vsel %vm65_vm2, %v395_v8, %v64_v13 }
  0x82   :  { %v53_v3 = vpop.f32.mrf.mxu0 }
  0x83   :  { %v57_v4 = vsel %vm56_vm1, %v53_v3, 0.0  ;;  %v68_v5 = vmul.f32 %v53_v3, %v53_v3 }
  0x84   :  { %58 = vadd.xlane.f32.xlu0 %v57_v4 }
  0x85   :  { %v69_v6 = vsel %vm56_vm1, %v68_v5, 0.0  ;;  %v393_v5 = vld [vmem:[%s580_s4] ss:$0 sm:$0xff] }
  0x8c   :  { %70 = vadd.xlane.f32.xlu0 %v69_v6 }
  0xf7   :  { %v59_v14 = vpop.xlane.xlu0 %58 }
  0xf8   :  { %v67_v16 = vmul.f32 %v490_v15, %v59_v14 }
  0xfa   :  { %v73_v18 = vmul.f32 %v67_v16, %v67_v16 }
  0xff   :  { %v71_v17 = vpop.xlane.xlu0 %70 }
 0x100   :  { %v72_v19 = vmul.f32 %v71_v17, %v490_v15 }
 0x102   :  { %v74_v20 = vsub.f32 %v72_v19, %v73_v18 }
 0x104   :  { %v75_v21 = vadd.f32 1e-05, %v74_v20 }
 0x106   :  { %396 = vrsqrt.f32 %v75_v21  ;;  %vm82_vm4 = vweird.f32 %v75_v21 }
 0x10c   :  { %v397_v22 = vpop.eup %396 }
 0x10d   :  { %v77_v23 = vmul.f32 %v397_v22, %v75_v21  ;;  %vm83_vm3 = vweird.f32 %v397_v22 }
 0x10e   :  { %vm84_vm5 = vmor %vm82_vm4, %vm83_vm3 }
 0x10f   :  { %v78_v24 = vmul.f32 %v397_v22, %v77_v23 }
 0x111   :  { %v79_v25 = vmul.f32 0.5, %v78_v24 }
 0x113   :  { %v80_v26 = vsub.f32 1.5, %v79_v25 }
 0x115   :  { %v81_v28 = vmul.f32 %v397_v22, %v80_v26 }
 0x117   :  { %v85_v29 = vsel %vm84_vm5, %v397_v22, %v81_v28 }
 0x118   :  { %v86_v30 = vmul.f32 %v85_v29, %v23_v27 }
 0x11a   :  { %91 = vperm.xlu1 %382, %v86_v30   ;;  %v87_v31 = vmul.f32 %v86_v30, %v67_v16 }
 0x11c   :  { %v88_v33 = vsub.f32 %v24_v32, %v87_v31  ;;  %v25_v31 = vld [vmem:[%s579_s3 + $0x10] sm:$0xf] }
 0x122   :  { %97 = vperm.xlu1 %382, %v88_v33  }
 0x18c   :  { %v92_v35 = vpop.permute.xlu1 %91 }
 0x18d   :  { %v94_v36 = vmul.f32 %v92_v35, %v53_v3 }
 0x194   :  { %v98_v37 = vpop.permute.xlu1 %97 }
 0x195   :  { %v100_v38 = vadd.f32 %v98_v37, %v94_v36  ;;  %v26_v36 = vld [vmem:[%s579_s3 + $0x18] sm:$0xf] }
 0x197   :  { %v101_v40 = vmax.f32 %v100_v38, 0.0 }
 0x199   :  { %139 = vrot.lane.b32.xlu1 %v101_v40, %s433_s29  ;;  %145 = vrot.lane.b32.xlu0 %v101_v40, %s434_s30  ;;  %v137_v41 = vmul.f32 %v392_v39, %v101_v40 }
 0x19a   :  { %157 = vrot.lane.b32.xlu2 %v101_v40, %s435_s6 }
 0x19b   :  { %138 = vst [vmem:[#allocation2 + $0x20] sm:$0xf] %v137_v41 }
 0x1a1   :  { %123 = vrot.lane.b32.xlu1 %v101_v40, %s436_s7 }
 0x1a2   :  { %151 = vrot.lane.b32.xlu2 %v101_v40, %s437_s8  ;;  %v168_v6 = vld [vmem:[#allocation2 + $0x20] sm:$0xff] }
 0x1a9   :  { %111 = vrot.lane.b32.xlu1 %v101_v40, %s438_s9 }
 0x1aa   :  { %129 = vrot.lane.b32.xlu2 %v101_v40, %s439_s10 }
 0x1b2   :  { %117 = vrot.lane.b32.xlu2 %v101_v40, %s440_s11 }
 0x1f4   :  { %v158_v43 = vpop.permute.xlu2 %157 }
 0x1f5   :  { %v161_v44 = vmul.f32 %v385_v42, %v158_v43  ;;  %v235_v43 = vld [vmem:[%s578_s2 + $0x8] sm:$0xff] }
 0x1f7   :  { %162 = vst [vmem:[#allocation2 + $0x8] sm:$0xf] %v161_v44  ;;  %v236_v44 = vld [vmem:[%s578_s2 + $0x10] sm:$0xff] }
 0x1fc   :  { %v152_v46 = vpop.permute.xlu2 %151 }
 0x1fd   :  { %v155_v47 = vmul.f32 %v386_v45, %v152_v46 }
 0x1fe   :  { %v172_v48 = vld [vmem:[#allocation2 + $0x8] sm:$0xff] }
 0x1ff   :  { %156 = vst [vmem:[#allocation2 + $0x38] sm:$0xf] %v155_v47  ;;  %184 = vmatpush.msra.mxu1 %v172_v48 }
 0x204   :  { %v130_v50 = vpop.permute.xlu2 %129 }
 0x205   :  { %v133_v51 = vmul.f32 %v387_v49, %v130_v50 }
 0x206   :  { %v171_v52 = vld [vmem:[#allocation2 + $0x38] sm:$0xff] }
 0x207   :  { %134 = vst [vmem:[#allocation2 + $0x10] sm:$0xf] %v133_v51  ;;  %185 = vmatpush.msra.mxu1 %v171_v52 }
 0x20b   :  { %v140_v56 = vpop.permute.xlu1 %139  ;;  %v146_v57 = vpop.permute.xlu0 %145 }
 0x20c   :  { %v143_v58 = vmul.f32 %v388_v53, %v140_v56  ;;  %v149_v59 = vmul.f32 %v389_v54, %v146_v57  ;;  %v118_v60 = vpop.permute.xlu2 %117 }
 0x20d   :  { %v121_v61 = vmul.f32 %v390_v55, %v118_v60 }
 0x20e   :  { %144 = vst [vmem:[#allocation2 + $0x28] sm:$0xf] %v143_v58  ;;  %v167_v9 = vld [vmem:[#allocation2 + $0x10] sm:$0xff] }
 0x20f   :  { %150 = vst [vmem:[#allocation2 + $0x40] sm:$0xf] %v149_v59 }
 0x210   :  { %122 = vst [vmem:[#allocation2] sm:$0xf] %v121_v61 }
 0x213   :  { %v124_v63 = vpop.permute.xlu1 %123 }
 0x214   :  { %v127_v2 = vmul.f32 %v391_v62, %v124_v63 }
 0x215   :  { %v169_v4 = vld [vmem:[#allocation2 + $0x28] sm:$0xff] }
 0x216   :  { %128 = vst [vmem:[#allocation2 + $0x18] sm:$0xf] %v127_v2  ;;  %v170_v3 = vld [vmem:[#allocation2 + $0x40] sm:$0xff] }
 0x217   :  { %186 = vmatpush.msra.mxu1 %v170_v3  ;;  %v165_v11 = vld [vmem:[#allocation2] sm:$0xff] }
 0x219   :  { %187 = vmatpush.msra.mxu1 %v169_v4 }
 0x21b   :  { %188 = vmatpush.msra.mxu1 %v168_v6  ;;  %v112_v7 = vpop.permute.xlu1 %111  ;;  %v27_v6 = vld [vmem:[%s579_s3 + $0x20] sm:$0xff] }
 0x21c   :  { %v115_v8 = vmul.f32 %v393_v5, %v112_v7 }
 0x21d   :  { %189 = vmatpush.msra.mxu1 %v167_v9  ;;  %v166_v10 = vld [vmem:[#allocation2 + $0x18] sm:$0xff] }
 0x21e   :  { %116 = vst [vmem:[#allocation2 + $0x30] sm:$0xf] %v115_v8 }
 0x21f   :  { %190 = vmatpush.msra.mxu1 %v166_v10 }
 0x221   :  { %191 = vmatpush.msra.mxu1 %v165_v11 }
 0x225   :  { %v164_v13 = vld [vmem:[#allocation2 + $0x30] sm:$0xff] }
 0x226   :  { %192 = vmatpush.msra.mxu1 %v164_v13 }
 0x227   :  { %365 = vmatmul.msk.f32.vlgmr.msra.gmra.mxu1 %vm173_vm6, %v163_v12 }
 0x2a4   :  { %v194_v14 = vpop.f32.mrf.mxu1 }
 0x2a5   :  { %v201_v16 = vmul.f32 %v194_v14, %v194_v14  ;;  %v197_v17 = vsel %vm56_vm1, %v194_v14, 0.0 }
 0x2a6   :  { %198 = vadd.xlane.f32.xlu2 %v197_v17 }
 0x2a7   :  { %v202_v18 = vsel %vm56_vm1, %v201_v16, 0.0 }
 0x2a8   :  { %203 = vadd.xlane.f32.xlu0 %v202_v18  ;;  %v28_v18 = vld [vmem:[%s579_s3 + $0x28] sm:$0xff] }
 0x319   :  { %v199_v19 = vpop.xlane.xlu2 %198 }
 0x31a   :  { %v200_v20 = vmul.f32 %v199_v19, %v490_v15 }
 0x31b   :  { %v204_v21 = vpop.xlane.xlu0 %203 }
 0x31c   :  { %v206_v22 = vmul.f32 %v200_v20, %v200_v20  ;;  %v205_v23 = vmul.f32 %v204_v21, %v490_v15 }
 0x31e   :  { %v207_v24 = vsub.f32 %v205_v23, %v206_v22  ;;  %v30_v23 = vld [vmem:[%s579_s3 + $0x38] sm:$0xff] }
 0x320   :  { %v208_v25 = vadd.f32 1e-05, %v207_v24 }
 0x322   :  { %398 = vrsqrt.f32 %v208_v25  ;;  %vm215_vm8 = vweird.f32 %v208_v25 }
 0x328   :  { %v399_v26 = vpop.eup %398 }
 0x329   :  { %v210_v27 = vmul.f32 %v399_v26, %v208_v25  ;;  %vm216_vm7 = vweird.f32 %v399_v26 }
 0x32a   :  { %vm217_vm9 = vmor %vm215_vm8, %vm216_vm7 }
 0x32b   :  { %v211_v28 = vmul.f32 %v399_v26, %v210_v27 }
 0x32d   :  { %v212_v29 = vmul.f32 0.5, %v211_v28 }
 0x32f   :  { %v213_v30 = vsub.f32 1.5, %v212_v29 }
 0x331   :  { %v214_v32 = vmul.f32 %v399_v26, %v213_v30 }
 0x333   :  { %v218_v33 = vsel %vm217_vm9, %v399_v26, %v214_v32 }
 0x334   :  { %v219_v34 = vmul.f32 %v218_v33, %v25_v31 }
 0x336   :  { %224 = vperm.xlu1 %382, %v219_v34   ;;  %v220_v35 = vmul.f32 %v219_v34, %v200_v20 }
 0x338   :  { %v221_v37 = vsub.f32 %v26_v36, %v220_v35 }
 0x33e   :  { %230 = vperm.xlu1 %382, %v221_v37  }
 0x3a8   :  { %v225_v38 = vpop.permute.xlu1 %224 }
 0x3a9   :  { %v227_v39 = vmul.f32 %v225_v38, %v194_v14 }
 0x3b0   :  { %v231_v40 = vpop.permute.xlu1 %230 }
 0x3b1   :  { %v233_v41 = vadd.f32 %v231_v40, %v227_v39 }
 0x3b3   :  { %v234_v42 = vmax.f32 %v233_v41, 0.0 }
 0x3b5   :  { %366 = vmatpush.msk.msra.mxu2 %vm56_vm1, %v234_v42 }
 0x3b6   :  { %367 = vmatmul.msk.f32.vlgmr.msra.gmra.mxu2 %vm237_vm10, %v235_v43 }
 0x3be   :  { %368 = vmatmul.msk.f32.gmra.mxu2 %vm237_vm10, %v236_v44 }
 0x439   :  { %v548_v45 = vpop.f32.mrf.mxu2 }
 0x43a   :  { %270 = vadd.xlane.f32.xlu1 %v548_v45  ;;  %v276_v46 = vmul.f32 %v548_v45, %v548_v45 }
 0x43c   :  { %278 = vadd.xlane.f32.xlu0 %v276_v46 }
 0x441   :  { %v267_v47 = vpop.f32.mrf.mxu2 }
 0x442   :  { %272 = vadd.xlane.f32.xlu2 %v267_v47  ;;  %v277_v48 = vmul.f32 %v267_v47, %v267_v47 }
 0x44a   :  { %280 = vadd.xlane.f32.xlu2 %v277_v48 }
 0x4ad   :  { %v271_v49 = vpop.xlane.xlu1 %270 }
 0x4ae   :  { %v274_v50 = vmul.f32 %v271_v49, %v490_v15 }
 0x4af   :  { %v279_v51 = vpop.xlane.xlu0 %278 }
 0x4b0   :  { %v284_v52 = vmul.f32 %v274_v50, %v274_v50  ;;  %v282_v53 = vmul.f32 %v279_v51, %v490_v15 }
 0x4b2   :  { %v286_v54 = vsub.f32 %v282_v53, %v284_v52 }
 0x4b4   :  { %v288_v55 = vadd.f32 1e-05, %v286_v54 }
 0x4b5   :  { %v273_v56 = vpop.xlane.xlu2 %272 }
 0x4b6   :  { %400 = vrsqrt.f32 %v288_v55  ;;  %v275_v57 = vmul.f32 %v273_v56, %v490_v15  ;;  %vm296_vm12 = vweird.f32 %v288_v55 }
 0x4b8   :  { %v285_v59 = vmul.f32 %v275_v57, %v275_v57 }
 0x4bc   :  { %v401_v58 = vpop.eup %400 }
 0x4bd   :  { %v291_v60 = vmul.f32 %v401_v58, %v288_v55  ;;  %v281_v61 = vpop.xlane.xlu2 %280  ;;  %vm297_vm11 = vweird.f32 %v401_v58 }
 0x4be   :  { %v283_v62 = vmul.f32 %v281_v61, %v490_v15  ;;  %vm298_vm13 = vmor %vm296_vm12, %vm297_vm11  ;;  %v29_v15 = vld [vmem:[%s579_s3 + $0x30] sm:$0xff]  ;;  %s441_s3 = smov [#allocation3]  }
 0x4bf   :  { %v292_v63 = vmul.f32 %v401_v58, %v291_v60  ;;  %s350_s21 = sshll.u32 %s441_s3, 4  ;;  %s351_s21 = int_to_ptr.vmem [resolvable:$true] %s350_s21 }
 0x4c0   :  { %v287_v2 = vsub.f32 %v283_v62, %v285_v59 }
 0x4c1   :  { %v293_v3 = vmul.f32 0.5, %v292_v63 }
 0x4c2   :  { %v289_v4 = vadd.f32 1e-05, %v287_v2 }
 0x4c3   :  { %v294_v5 = vsub.f32 1.5, %v293_v3 }
 0x4c4   :  { %402 = vrsqrt.f32 %v289_v4  ;;  %vm306_vm15 = vweird.f32 %v289_v4 }
 0x4c5   :  { %v295_v7 = vmul.f32 %v401_v58, %v294_v5 }
 0x4c7   :  { %v299_v8 = vsel %vm298_vm13, %v401_v58, %v295_v7 }
 0x4c8   :  { %v310_v9 = vmul.f32 %v299_v8, %v27_v6 }
 0x4ca   :  { %v403_v10 = vpop.eup %402  ;;  %318 = vperm.xlu0 %383, %v310_v9   ;;  %v312_v11 = vmul.f32 %v310_v9, %v274_v50 }
 0x4cb   :  { %v301_v12 = vmul.f32 %v403_v10, %v289_v4  ;;  %vm307_vm14 = vweird.f32 %v403_v10 }
 0x4cc   :  { %v314_v13 = vsub.f32 %v29_v15, %v312_v11  ;;  %vm308_vm0 = vmor %vm306_vm15, %vm307_vm14 }
 0x4cd   :  { %v302_v14 = vmul.f32 %v403_v10, %v301_v12 }
 0x4ce   :  { %330 = vperm.xlu1 %382, %v314_v13  }
 0x4cf   :  { %v303_v16 = vmul.f32 0.5, %v302_v14 }
 0x4d1   :  { %v304_v17 = vsub.f32 1.5, %v303_v16 }
 0x4d3   :  { %v305_v19 = vmul.f32 %v403_v10, %v304_v17 }
 0x4d5   :  { %v309_v20 = vsel %vm308_vm0, %v403_v10, %v305_v19 }
 0x4d6   :  { %v311_v21 = vmul.f32 %v309_v20, %v28_v18 }
 0x4d8   :  { %323 = vperm.xlu2 %384, %v311_v21   ;;  %v313_v22 = vmul.f32 %v311_v21, %v275_v57 }
 0x4da   :  { %v315_v24 = vsub.f32 %v30_v23, %v313_v22 }
 0x4e0   :  { %335 = vperm.xlu2 %384, %v315_v24  }
 0x532   :  { %v324_v25 = vpop.permute.xlu2 %323 }
 0x533   :  { %v327_v26 = vmul.f32 %v324_v25, %v267_v47 }
 0x53a   :  { %v336_v27 = vpop.permute.xlu2 %335 }
 0x53b   :  { %v339_v28 = vadd.f32 %v336_v27, %v327_v26 }
 0x53c   :  { %v319_v29 = vpop.permute.xlu0 %318 }
 0x53d   :  { %v341_v30 = vadd.f32 %v339_v28, %v476_v0  ;;  %v326_v32 = vmul.f32 %v319_v29, %v548_v45 }
 0x53f   :  { %v343_v31 = vmax.f32 %v341_v30, 0.0 }
 0x540   :  { %v331_v33 = vpop.permute.xlu1 %330 }
 0x541   :  { %345 = vst [vmem:[#allocation3 + $0x8] sm:$0xff] %v343_v31  ;;  %v338_v34 = vadd.f32 %v331_v33, %v326_v32 }
 0x543   :  { %v340_v35 = vadd.f32 %v338_v34, %v481_v1 }
 0x545   :  { %v342_v36 = vmax.f32 %v340_v35, 0.0 }
 0x547   :  { %344 = vst [vmem:[#allocation3] sm:$0xff] %v342_v36 }
 0x548   :  { %358 = dma.vmem_to_hbm [thread:$0]  %s351_s21, 256, %s353_s20, [#allocation4], %s442_s22, %s442_s22, %s440_s11  }
 0x549   :  { %428 = dma.done.wait [#allocation4], 256  }
 0x54a   :  { %429 = vsyncadd [#allocation4], 4294967040 }
 0x54b   :  { %363 = vsyncpa [#allocation4], 1 }

</bundles_post_ra>
